<compile_context>
chip_gen: v6e
topology: v6e:2x2x1
jax: 0.10.0
libtpu: 0.0.40
codegen_flags: <defaults>
</compile_context>

<pallas_src>
import functools

import jax
import jax.numpy as jnp
from jax.experimental import pallas as pl
from jax.experimental.pallas import tpu as pltpu


def _round_up(n, m):
    return ((n + m - 1) // m) * m


def _cdiv(a, b):
    return (a + b - 1) // b


def _num_tensorcores():
    """Best-effort count of TensorCores sharing one Pallas grid on this chip."""
    try:
        kind = (getattr(jax.devices()[0], "device_kind", "") or "").lower()
    except Exception:
        return 1
    # v7x and the v4/v5p megacore chips expose 2 TensorCores per device;
    # v5e / v6e have a single TensorCore.
    if "v7" in kind or "v4" in kind or "v5p" in kind:
        return 2
    return 1


def _plan_batch(B, batch_tile, num_tc):
    """Pick (tile, grid). Tile is a multiple of 16 capped at 2048.

    Single-TC: one big tile (grid=1) until the cap -- the grid is a serial
    loop, so an extra ~0.35us step boundary is not worth overlapping a
    sub-microsecond DMA.  Multi-TC: keep the grid a multiple of num_tc so
    the 'parallel' batch axis shards evenly and no core idles.
    """
    cap = 2048
    if batch_tile is not None:
        tb = batch_tile
        grid = _cdiv(B, tb)
        if num_tc > 1 and grid % num_tc:
            grid = _round_up(grid, num_tc)
        return tb, max(grid, 1)
    if num_tc > 1:
        tb = min(_round_up(_cdiv(B, num_tc), 16), cap)
        grid = _cdiv(B, tb)
        if grid % num_tc:
            grid = _round_up(grid, num_tc)
        return tb, grid
    tb = min(_round_up(B, 16), cap)
    return tb, _cdiv(B, tb)


def ffnn_kernel(x_ref, w1_ref, b1_ref, w2_ref, b2_ref, w3_ref, b3_ref, o_ref,
                *, compute_dtype):
    # x arrives as f32; cast to the MXU dtype in-kernel (VALU work hidden under
    # the MXU) so the wrapper doesn't pay an extra HBM read+write for the cast.
    x = x_ref[...].astype(compute_dtype)
    # fc1 (MXU, f32 accumulation) + bias + ReLU in f32
    h1 = jnp.dot(x, w1_ref[...], preferred_element_type=jnp.float32)
    h1 = jnp.maximum(h1 + b1_ref[...], 0.0)
    # dropout (eval mode) -> identity
    # TODO(synk): training-mode dropout would use pltpu.prng_seed + stateful_bernoulli.
    # fc2 + bias + ReLU (activations re-cast to the matmul dtype for the MXU)
    h2 = jnp.dot(h1.astype(compute_dtype), w2_ref[...],
                 preferred_element_type=jnp.float32)
    h2 = jnp.maximum(h2 + b2_ref[...], 0.0)
    # fc3 (logits, no activation); output lane-padded to a multiple of 128
    out = jnp.dot(h2.astype(compute_dtype), w3_ref[...],
                  preferred_element_type=jnp.float32) + b3_ref[...]
    o_ref[...] = out.astype(o_ref.dtype)


def prepare_params(params, compute_dtype=jnp.bfloat16):
    """One-time prep: cast weights to the MXU dtype and zero-pad the logits dim
    to a multiple of 128 (lane-dense output).  Call once, reuse every forward."""
    C = params["w3"].shape[1]
    pad = _round_up(C, 128) - C
    return {
        "w1": params["w1"].astype(compute_dtype),
        "b1": params["b1"].astype(jnp.float32),
        "w2": params["w2"].astype(compute_dtype),
        "b2": params["b2"].astype(jnp.float32),
        "w3": jnp.pad(params["w3"], ((0, 0), (0, pad))).astype(compute_dtype),
        "b3": jnp.pad(params["b3"], ((0, 0), (0, pad))).astype(jnp.float32),
    }


@functools.partial(
    jax.jit,
    static_argnames=("n_classes", "batch_tile", "compute_dtype", "out_dtype", "num_tc"))
def ffnn_forward(x, kparams, *, n_classes, batch_tile=None,
                 compute_dtype=jnp.bfloat16, out_dtype=jnp.float32, num_tc=1):
    """x: [B, D] float32. kparams: output of prepare_params() ([in,out]/[1,out])."""
    B, D = x.shape
    H1 = kparams["w1"].shape[1]
    H2 = kparams["w2"].shape[1]
    C_pad = kparams["w3"].shape[1]

    tb, grid_b = _plan_batch(B, batch_tile, num_tc)
    B_pad = tb * grid_b

    xk = x.astype(jnp.float32)
    if B_pad != B:                                # ragged batch -> pad tail rows
        xk = jnp.pad(xk, ((0, B_pad - B), (0, 0)))

    # Weights/biases never change across grid steps -> single-buffer them.
    def fixed(shape):
        return pl.BlockSpec(shape, lambda i: (0, 0), pipeline_mode=pl.Buffered(1))

    w_itemsize = jnp.dtype(compute_dtype).itemsize
    flops = 2 * B_pad * (D * H1 + H1 * H2 + H2 * C_pad)
    bytes_accessed = (
        B_pad * D * 4                                       # x stream (f32)
        + (D * H1 + H1 * H2 + H2 * C_pad) * w_itemsize      # weights
        + (H1 + H2 + C_pad) * 4                             # biases (f32)
        + B_pad * C_pad * jnp.dtype(out_dtype).itemsize     # output stream
    )

    out_padded = pl.pallas_call(
        functools.partial(ffnn_kernel, compute_dtype=compute_dtype),
        out_shape=jax.ShapeDtypeStruct((B_pad, C_pad), out_dtype),
        grid_spec=pltpu.PrefetchScalarGridSpec(
            num_scalar_prefetch=0,
            grid=(grid_b,),
            in_specs=[
                pl.BlockSpec((tb, D), lambda i: (i, 0)),   # x tile (f32, streamed)
                fixed((D, H1)),                            # w1
                fixed((1, H1)),                            # b1
                fixed((H1, H2)),                           # w2
                fixed((1, H2)),                            # b2
                fixed((H2, C_pad)),                        # w3 (lane-padded)
                fixed((1, C_pad)),                         # b3 (lane-padded)
            ],
            out_specs=pl.BlockSpec((tb, C_pad), lambda i: (i, 0)),
        ),
        compiler_params=pltpu.CompilerParams(
            dimension_semantics=("parallel",),             # megacore / 2-TC sharding
            vmem_limit_bytes=32 * 1024 * 1024,             # fits v7x's 64 MiB too
        ),
        cost_estimate=pl.CostEstimate(
            flops=flops, transcendentals=0, bytes_accessed=bytes_accessed),
    )(xk, kparams["w1"], kparams["b1"], kparams["w2"], kparams["b2"],
      kparams["w3"], kparams["b3"])

    return out_padded[:B, :n_classes]


def init_params(key, sbert_dim, n_classes, h1=256, h2=128):
    """Deterministic init mimicking nn.Linear's uniform(-1/sqrt(fan_in), +)."""
    ks = jax.random.split(key, 6)

    def linear(kw, kb, fan_in, fan_out):
        bound = 1.0 / jnp.sqrt(fan_in)
        w = jax.random.uniform(kw, (fan_in, fan_out), jnp.float32, -bound, bound)
        b = jax.random.uniform(kb, (1, fan_out), jnp.float32, -bound, bound)
        return w, b

    w1, b1 = linear(ks[0], ks[1], sbert_dim, h1)
    w2, b2 = linear(ks[2], ks[3], h1, h2)
    w3, b3 = linear(ks[4], ks[5], h2, n_classes)
    return {"w1": w1, "b1": b1, "w2": w2, "b2": b2, "w3": w3, "b3": b3}


def ffnn_reference_f32(x, p):
    h1 = jnp.maximum(x @ p["w1"] + p["b1"], 0.0)
    h2 = jnp.maximum(h1 @ p["w2"] + p["b2"], 0.0)
    return h2 @ p["w3"] + p["b3"]


def ffnn_reference_matched(x, p, compute_dtype):
    """Reference mirroring the kernel's dtype handling (bf16 matmuls, f32 accum)."""
    cd = compute_dtype
    h1 = jnp.maximum(
        jnp.dot(x.astype(cd), p["w1"].astype(cd),
                preferred_element_type=jnp.float32) + p["b1"], 0.0)
    h2 = jnp.maximum(
        jnp.dot(h1.astype(cd), p["w2"].astype(cd),
                preferred_element_type=jnp.float32) + p["b2"], 0.0)
    return jnp.dot(h2.astype(cd), p["w3"].astype(cd),
                   preferred_element_type=jnp.float32) + p["b3"]


if __name__ == "__main__":
    key = jax.random.PRNGKey(0)
    k_x, k_p = jax.random.split(key)

    B = 64           # small deterministic test batch
    SBERT_DIM = 256  # embedding dim (lane-aligned)
    N_CLASSES = 8    # padded to 128 inside the wrapper, sliced back outside

    x = jax.random.normal(k_x, (B, SBERT_DIM), jnp.float32)
    params = init_params(k_p, SBERT_DIM, N_CLASSES)

    kparams = prepare_params(params)        # one-time weight cast + lane pad
    num_tc = _num_tensorcores()

    out = ffnn_forward(x, kparams, n_classes=N_CLASSES, num_tc=num_tc)
    out = jax.block_until_ready(out)
    assert out.shape == (B, N_CLASSES)

    # Tight check vs. a reference using identical dtype handling.
    ref_matched = ffnn_reference_matched(x, params, jnp.bfloat16)
    assert jnp.allclose(out, ref_matched, atol=1e-2, rtol=1e-2), (
        float(jnp.max(jnp.abs(out - ref_matched))))

    # Loose check vs. the pure-f32 PyTorch-equivalent forward.
    ref_f32 = ffnn_reference_f32(x, params)
    assert jnp.allclose(out, ref_f32, atol=1e-1, rtol=1e-1), (
        float(jnp.max(jnp.abs(out - ref_f32))))

    print("KERNEL_OK")
</pallas_src>

<mosaic_0001>
module attributes {stable_mosaic.version = 11 : i64} {
  func.func @ffnn_kernel(%arg0: i32, %arg1: memref<64x256xf32, #tpu.memory_space<vmem>>, %arg2: memref<256x256xbf16, #tpu.memory_space<vmem>>, %arg3: memref<1x256xf32, #tpu.memory_space<vmem>>, %arg4: memref<256x128xbf16, #tpu.memory_space<vmem>>, %arg5: memref<1x128xf32, #tpu.memory_space<vmem>>, %arg6: memref<128x128xbf16, #tpu.memory_space<vmem>>, %arg7: memref<1x128xf32, #tpu.memory_space<vmem>>, %arg8: memref<64x128xf32, #tpu.memory_space<vmem>>) attributes {dimension_semantics = [#tpu.dimension_semantics<parallel>], iteration_bounds = array<i64: 1>, scalar_prefetch = 0 : i64, scratch_operands = 0 : i64, tpu.core_type = #tpu.core_type<tc>, window_params = [{transform_indices = @transform_0, window_bounds = array<i64: 64, 256>}, {pipeline_mode = #tpu.pipeline_mode<synchronous>, transform_indices = @transform_1, window_bounds = array<i64: 256, 256>}, {pipeline_mode = #tpu.pipeline_mode<synchronous>, transform_indices = @transform_2, window_bounds = array<i64: 1, 256>}, {pipeline_mode = #tpu.pipeline_mode<synchronous>, transform_indices = @transform_3, window_bounds = array<i64: 256, 128>}, {pipeline_mode = #tpu.pipeline_mode<synchronous>, transform_indices = @transform_4, window_bounds = array<i64: 1, 128>}, {pipeline_mode = #tpu.pipeline_mode<synchronous>, transform_indices = @transform_5, window_bounds = array<i64: 128, 128>}, {pipeline_mode = #tpu.pipeline_mode<synchronous>, transform_indices = @transform_6, window_bounds = array<i64: 1, 128>}, {transform_indices = @transform_7, window_bounds = array<i64: 64, 128>}]} {
    %c0 = arith.constant 0 : index
    %c0_0 = arith.constant 0 : index
    %0 = vector.load %arg1[%c0, %c0_0] : memref<64x256xf32, #tpu.memory_space<vmem>>, vector<64x256xf32>
    %1 = arith.truncf %0 : vector<64x256xf32> to vector<64x256xbf16>
    %c0_1 = arith.constant 0 : index
    %c0_2 = arith.constant 0 : index
    %2 = vector.load %arg2[%c0_1, %c0_2] : memref<256x256xbf16, #tpu.memory_space<vmem>>, vector<256x256xbf16>
    %cst = arith.constant dense<0.000000e+00> : vector<64x256xf32>
    %3 = tpu.matmul %1, %2, %cst {dimension_numbers = #tpu.dot_dimension_numbers<[1], [0], [0], [1], [0, 0, 1, 1], [], []>} : vector<64x256xbf16>, vector<256x256xbf16>, vector<64x256xf32> -> vector<64x256xf32>
    %c0_3 = arith.constant 0 : index
    %c0_4 = arith.constant 0 : index
    %4 = vector.load %arg3[%c0_3, %c0_4] : memref<1x256xf32, #tpu.memory_space<vmem>>, vector<1x256xf32>
    %5 = vector.broadcast %4 : vector<1x256xf32> to vector<64x256xf32>
    %6 = arith.addf %3, %5 : vector<64x256xf32>
    %cst_5 = arith.constant 0.000000e+00 : f32
    %7 = vector.broadcast %cst_5 : f32 to vector<64x256xf32>
    %8 = arith.maximumf %6, %7 : vector<64x256xf32>
    %9 = arith.truncf %8 : vector<64x256xf32> to vector<64x256xbf16>
    %c0_6 = arith.constant 0 : index
    %c0_7 = arith.constant 0 : index
    %10 = vector.load %arg4[%c0_6, %c0_7] : memref<256x128xbf16, #tpu.memory_space<vmem>>, vector<256x128xbf16>
    %cst_8 = arith.constant dense<0.000000e+00> : vector<64x128xf32>
    %11 = tpu.matmul %9, %10, %cst_8 {dimension_numbers = #tpu.dot_dimension_numbers<[1], [0], [0], [1], [0, 0, 1, 1], [], []>} : vector<64x256xbf16>, vector<256x128xbf16>, vector<64x128xf32> -> vector<64x128xf32>
    %c0_9 = arith.constant 0 : index
    %c0_10 = arith.constant 0 : index
    %12 = vector.load %arg5[%c0_9, %c0_10] : memref<1x128xf32, #tpu.memory_space<vmem>>, vector<1x128xf32>
    %13 = vector.broadcast %12 : vector<1x128xf32> to vector<64x128xf32>
    %14 = arith.addf %11, %13 : vector<64x128xf32>
    %cst_11 = arith.constant 0.000000e+00 : f32
    %15 = vector.broadcast %cst_11 : f32 to vector<64x128xf32>
    %16 = arith.maximumf %14, %15 : vector<64x128xf32>
    %17 = arith.truncf %16 : vector<64x128xf32> to vector<64x128xbf16>
    %c0_12 = arith.constant 0 : index
    %c0_13 = arith.constant 0 : index
    %18 = vector.load %arg6[%c0_12, %c0_13] : memref<128x128xbf16, #tpu.memory_space<vmem>>, vector<128x128xbf16>
    %cst_14 = arith.constant dense<0.000000e+00> : vector<64x128xf32>
    %19 = tpu.matmul %17, %18, %cst_14 {dimension_numbers = #tpu.dot_dimension_numbers<[1], [0], [0], [1], [0, 0, 1, 1], [], []>} : vector<64x128xbf16>, vector<128x128xbf16>, vector<64x128xf32> -> vector<64x128xf32>
    %c0_15 = arith.constant 0 : index
    %c0_16 = arith.constant 0 : index
    %20 = vector.load %arg7[%c0_15, %c0_16] : memref<1x128xf32, #tpu.memory_space<vmem>>, vector<1x128xf32>
    %21 = vector.broadcast %20 : vector<1x128xf32> to vector<64x128xf32>
    %22 = arith.addf %19, %21 : vector<64x128xf32>
    %c0_17 = arith.constant 0 : index
    %c0_18 = arith.constant 0 : index
    %23 = vector.load %arg8[%c0_17, %c0_18] : memref<64x128xf32, #tpu.memory_space<vmem>>, vector<64x128xf32>
    tpu.vector_store %arg8[%c0_17, %c0_18], %22 {strides = array<i32>} : memref<64x128xf32, #tpu.memory_space<vmem>>, vector<64x128xf32>,
    return
  }
  func.func @transform_0(%arg0: i32) -> (i32, i32) {
    %c0_i32 = arith.constant 0 : i32
    %c0_i32_0 = arith.constant 0 : i32
    return %arg0, %c0_i32 : i32, i32
  }
  func.func @transform_1(%arg0: i32) -> (i32, i32) {
    %c0_i32 = arith.constant 0 : i32
    %c0_i32_0 = arith.constant 0 : i32
    %c0_i32_1 = arith.constant 0 : i32
    return %c0_i32, %c0_i32_0 : i32, i32
  }
  func.func @transform_2(%arg0: i32) -> (i32, i32) {
    %c0_i32 = arith.constant 0 : i32
    %c0_i32_0 = arith.constant 0 : i32
    %c0_i32_1 = arith.constant 0 : i32
    return %c0_i32, %c0_i32_0 : i32, i32
  }
  func.func @transform_3(%arg0: i32) -> (i32, i32) {
    %c0_i32 = arith.constant 0 : i32
    %c0_i32_0 = arith.constant 0 : i32
    %c0_i32_1 = arith.constant 0 : i32
    return %c0_i32, %c0_i32_0 : i32, i32
  }
  func.func @transform_4(%arg0: i32) -> (i32, i32) {
    %c0_i32 = arith.constant 0 : i32
    %c0_i32_0 = arith.constant 0 : i32
    %c0_i32_1 = arith.constant 0 : i32
    return %c0_i32, %c0_i32_0 : i32, i32
  }
  func.func @transform_5(%arg0: i32) -> (i32, i32) {
    %c0_i32 = arith.constant 0 : i32
    %c0_i32_0 = arith.constant 0 : i32
    %c0_i32_1 = arith.constant 0 : i32
    return %c0_i32, %c0_i32_0 : i32, i32
  }
  func.func @transform_6(%arg0: i32) -> (i32, i32) {
    %c0_i32 = arith.constant 0 : i32
    %c0_i32_0 = arith.constant 0 : i32
    %c0_i32_1 = arith.constant 0 : i32
    return %c0_i32, %c0_i32_0 : i32, i32
  }
  func.func @transform_7(%arg0: i32) -> (i32, i32) {
    %c0_i32 = arith.constant 0 : i32
    %c0_i32_0 = arith.constant 0 : i32
    return %arg0, %c0_i32 : i32, i32
  }
}

</mosaic_0001>

<bundles_post_ra>
// kernel: ffnn_forward.1
= control target key start
LH: loop header
LB: loop body
LE: loop exit
PB: predicated region body
PF: predicated region fallthrough
CT: control target
= control target key end

     0   :  { %12 = vsyncpa [#allocation3], 0  ;;  %s1216_s0 = inlined_call_operand.hbm [shape: f32[64,256], index: 0, kind: input, shape index: {}]   ;;  %s1217_s1 = inlined_call_operand.hbm [shape: bf16[256,256], index: 1, kind: input, shape index: {}]   ;;  %s1218_s2 = inlined_call_operand.hbm [shape: f32[1,256], index: 2, kind: input, shape index: {}]   ;;  %s1219_s3 = inlined_call_operand.hbm [shape: bf16[256,128], index: 3, kind: input, shape index: {}]   ;;  %s1220_s4 = inlined_call_operand.vmem [shape: f32[1,128], index: 4, kind: input, shape index: {}]   ;;  %s1221_s5 = inlined_call_operand.hbm [shape: bf16[128,128], index: 5, kind: input, shape index: {}]   ;;  %s1222_s6 = inlined_call_operand.vmem [shape: f32[1,128], index: 6, kind: input, shape index: {}]   ;;  %s1223_s7 = inlined_call_operand.vmem [shape: f32[64,128], index: 7, kind: output, shape index: {}]  }
   0x1   :  { %13 = vsyncpa [#allocation5], 0 }
   0x2   :  { %14 = vsyncpa [#allocation8], 0  ;;  %s1104_s24 = smov [#allocation4]  }
   0x3   :  { %s32_s25 = sshll.u32 %s1104_s24, 4  ;;  %s33_s25 = int_to_ptr.vmem [resolvable:$true] %s32_s25 }
   0x4   :  { %s1006_s26 = scalar_lea.vmem %s33_s25, 4096  ;;  %p1011_p1 = scmp.lt.s32.totalorder %s33_s25, %s33_s25 }
   0x5   :  { %p1007_p0 = scmp.ne.s32.totalorder %s33_s25, %s1006_s26  ;;  %p1012_p2 = scmp.lt.s32.totalorder %s1006_s26, %s1006_s26 }
   0x7   :  { %p1013_p3 = por %p1012_p2, %p1011_p1 }
   0x9   :  { %p1014_p4 = pnand %p1013_p3, %p1007_p0 }
   0xb   :  { %1017 = shalt.err (!%p1014_p4)
}
   0xc   :  { %s1105_s27 = smov 128   ;;  %s1106_s28 = smov 8  }
   0xd   :  { %38 = dma.hbm_to_vmem [thread:$0]  %s1217_s1, 4096, %s33_s25, [#allocation5], %s1105_s27, %s1105_s27, %s1106_s28  }
   0xe   :  { %s1107_s8 = smov [#allocation7]  }
   0xf   :  { %s54_s9 = sshll.u32 %s1107_s8, 4  ;;  %s55_s9 = int_to_ptr.vmem [resolvable:$true] %s54_s9 }
  0x10   :  { %s1026_s10 = scalar_lea.vmem %s55_s9, 2048  ;;  %p1031_p6 = scmp.lt.s32.totalorder %s55_s9, %s55_s9 }
  0x11   :  { %p1027_p5 = scmp.ne.s32.totalorder %s55_s9, %s1026_s10  ;;  %p1032_p7 = scmp.lt.s32.totalorder %s1026_s10, %s1026_s10 }
  0x13   :  { %p1033_p8 = por %p1032_p7, %p1031_p6 }
  0x15   :  { %p1034_p9 = pnand %p1033_p8, %p1027_p5 }
  0x17   :  { %1037 = shalt.err (!%p1034_p9)
}
  0x18   :  { %s1108_s11 = smov 64   ;;  %s1109_s12 = smov 4  }
  0x19   :  { %60 = dma.hbm_to_vmem [thread:$0]  %s1219_s3, 2048, %s55_s9, [#allocation8], %s1108_s11, %s1108_s11, %s1109_s12  }
  0x1a   :  { %s1110_s1 = smov [#allocation2]  }
  0x1b   :  { %s20_s15 = sshll.u32 %s1110_s1, 4  ;;  %s21_s15 = int_to_ptr.vmem [resolvable:$true] %s20_s15 }
  0x1c   :  { %s1046_s16 = scalar_lea.vmem %s21_s15, 2048  ;;  %p1051_p11 = scmp.lt.s32.totalorder %s21_s15, %s21_s15 }
  0x1d   :  { %p1047_p10 = scmp.ne.s32.totalorder %s21_s15, %s1046_s16  ;;  %p1052_p12 = scmp.lt.s32.totalorder %s1046_s16, %s1046_s16 }
  0x1f   :  { %p1053_p13 = por %p1052_p12, %p1051_p11 }
  0x21   :  { %p1054_p0 = pnand %p1053_p13, %p1047_p10 }
  0x23   :  { %1057 = shalt.err (!%p1054_p0)
}
  0x24   :  { %s1111_s17 = smov 256   ;;  %s1112_s18 = smov 16  }
  0x25   :  { %26 = dma.hbm_to_vmem [thread:$0]  %s1216_s0, 2048, %s21_s15, [#allocation3], %s1111_s17, %s1111_s17, %s1112_s18  }
  0x26   :  { %s1113_s21 = smov [#allocation6]   ;;  %s1114_s3 = smov [#allocation9]  }
  0x27   :  { %s45_s22 = sshll.u32 %s1113_s21, 4  ;;  %s68_s23 = sshll.u32 %s1114_s3, 4  ;;  %s46_s22 = int_to_ptr.vmem [resolvable:$true] %s45_s22  ;;  %s69_s23 = int_to_ptr.vmem [resolvable:$true] %s68_s23 }
  0x28   :  { %s1066_s24 = scalar_lea.vmem %s46_s22, 32  ;;  %p1071_p2 = scmp.lt.s32.totalorder %s46_s22, %s46_s22 }
  0x29   :  { %p1067_p1 = scmp.ne.s32.totalorder %s46_s22, %s1066_s24  ;;  %p1072_p3 = scmp.lt.s32.totalorder %s1066_s24, %s1066_s24 }
  0x2b   :  { %p1073_p4 = por %p1072_p3, %p1071_p2 }
  0x2d   :  { %p1074_p5 = pnand %p1073_p4, %p1067_p1 }
  0x2f   :  { %1077 = shalt.err (!%p1074_p5)
}
  0x30   :  { %48 = dma.hbm_to_vmem [thread:$0]  %s1218_s2, 32, %s46_s22, [#allocation5]  }
  0x31   :  { %s1086_s27 = scalar_lea.vmem %s69_s23, 1024  ;;  %p1091_p7 = scmp.lt.s32.totalorder %s69_s23, %s69_s23 }
  0x32   :  { %p1087_p6 = scmp.ne.s32.totalorder %s69_s23, %s1086_s27  ;;  %p1092_p8 = scmp.lt.s32.totalorder %s1086_s27, %s1086_s27 }
  0x34   :  { %p1093_p9 = por %p1092_p8, %p1091_p7 }
  0x36   :  { %p1094_p10 = pnand %p1093_p9, %p1087_p6 }
  0x38   :  { %1097 = shalt.err (!%p1094_p10)
}
  0x39   :  { %74 = dma.hbm_to_vmem [thread:$0]  %s1221_s5, 1024, %s69_s23, [#allocation8], %s1108_s11, %s1108_s11, %s1109_s12  }
  0x3a   :  { %1098 = dma.done.wait [#allocation3], 2048  }
  0x3b   :  { %1099 = vsyncadd [#allocation3], 4294965248 }
  0x3c   :  { %1100 = dma.done.wait [#allocation5], 4128  }
  0x3d   :  { %1101 = vsyncadd [#allocation5], 4294963168 }
  0x3e   :  { %1102 = dma.done.wait [#allocation8], 3072  }
  0x3f   :  { %1103 = vsyncadd [#allocation8], 4294964224  ;;  %v926_v0 = vld [vmem:[#allocation4 + $0x74] ss:$8 sps:$4 sm:$0xff]   ;;  %v928_v1 = vld [vmem:[#allocation4 + $0x70] ss:$8 sps:$4 sm:$0xff]  }
  0x40   :  { %321 = vmatprep.subr.bf16.mxu0 %v926_v0  ;;  %v929_v2 = vld [vmem:[#allocation4 + $0x64] ss:$8 sps:$4 sm:$0xff]   ;;  %v931_v3 = vld [vmem:[#allocation4 + $0x60] ss:$8 sps:$4 sm:$0xff]   ;;  %v932_v4 = vld [vmem:[#allocation4 + $0x54] ss:$8 sps:$4 sm:$0xff]  }
  0x41   :  { %322 = vmatpush1.bf16.msra.mxu0 %v928_v1  ;;  %v934_v5 = vld [vmem:[#allocation4 + $0x50] ss:$8 sps:$4 sm:$0xff]   ;;  %v935_v6 = vld [vmem:[#allocation4 + $0x44] ss:$8 sps:$4 sm:$0xff]   ;;  %v937_v7 = vld [vmem:[#allocation4 + $0x40] ss:$8 sps:$4 sm:$0xff]  }
  0x42   :  { %323 = vmatprep.subr.bf16.mxu0 %v929_v2  ;;  %v938_v8 = vld [vmem:[#allocation4 + $0x34] ss:$8 sps:$4 sm:$0xff]   ;;  %v940_v9 = vld [vmem:[#allocation4 + $0x30] ss:$8 sps:$4 sm:$0xff]   ;;  %v941_v10 = vld [vmem:[#allocation4 + $0x24] ss:$8 sps:$4 sm:$0xff]  }
  0x43   :  { %v943_v11 = vld [vmem:[#allocation4 + $0x20] ss:$8 sps:$4 sm:$0xff]   ;;  %v944_v12 = vld [vmem:[#allocation4 + $0x14] ss:$8 sps:$4 sm:$0xff]   ;;  %v946_v16 = vld [vmem:[#allocation4 + $0x10] ss:$8 sps:$4 sm:$0xff]  }
  0x44   :  { %v94_v13 = vld [vmem:[#allocation2 + $0x8] sm:$0xff]  ;;  %v96_v14 = vld [vmem:[#allocation2 + $0x18] sm:$0xff]  ;;  %v93_v45 = vld [vmem:[#allocation2] sm:$0xff] }
  0x45   :  { %324 = vmatpush1.bf16.msra.mxu0 %v931_v3  ;;  %v110_v15 = vpack.c.bf16 %v96_v14, %v94_v13  ;;  %v947_v17 = vld [vmem:[#allocation4 + $0x4] ss:$8 sps:$4 sm:$0xff]   ;;  %v949_v18 = vld [vmem:[#allocation4] ss:$8 sps:$4 sm:$0xff]   ;;  %v950_v19 = vld [vmem:[#allocation4 + $0xf4] ss:$8 sps:$4 sm:$0xff]  }
  0x46   :  { %325 = vmatprep.subr.bf16.mxu0 %v932_v4  ;;  %v974_v20 = vld [vmem:[#allocation7 + $0x78] sm:$0xff]   ;;  %v976_v23 = vld [vmem:[#allocation7 + $0x70] sm:$0xff]   ;;  %v978_v25 = vld [vmem:[#allocation7 + $0x68] sm:$0xff]  }
  0x47   :  { %353 = vmatprep.mubr.bf16.mxu0 %v110_v15  ;;  %v975_v21 = vld [vmem:[#allocation7 + $0x38] sm:$0xff]   ;;  %839 = vmatprep.subr.bf16.mxu1 %v974_v20  ;;  %v977_v24 = vld [vmem:[#allocation7 + $0x30] sm:$0xff]   ;;  %v953_v26 = vld [vmem:[#allocation4 + $0xe4] ss:$8 sps:$4 sm:$0xff]  }
  0x48   :  { %v952_v22 = vld [vmem:[#allocation4 + $0xf0] ss:$8 sps:$4 sm:$0xff]   ;;  %840 = vmatpush3.bf16.msra.mxu1 %v975_v21  ;;  %v955_v27 = vld [vmem:[#allocation4 + $0xe0] ss:$8 sps:$4 sm:$0xff]   ;;  %v956_v30 = vld [vmem:[#allocation4 + $0xd4] ss:$8 sps:$4 sm:$0xff]  }
  0x49   :  { %326 = vmatpush1.bf16.msra.mxu0 %v934_v5  ;;  %841 = vmatprep.subr.bf16.mxu1 %v976_v23  ;;  %v979_v28 = vld [vmem:[#allocation7 + $0x28] sm:$0xff]   ;;  %v980_v29 = vld [vmem:[#allocation7 + $0x60] sm:$0xff]   ;;  %v982_v33 = vld [vmem:[#allocation7 + $0x58] sm:$0xff]  }
  0x4a   :  { %327 = vmatprep.subr.bf16.mxu0 %v935_v6  ;;  %v981_v31 = vld [vmem:[#allocation7 + $0x20] sm:$0xff]   ;;  %v958_v32 = vld [vmem:[#allocation4 + $0xd0] ss:$8 sps:$4 sm:$0xff]   ;;  %v962_v37 = vld [vmem:[#allocation4 + $0xb4] ss:$8 sps:$4 sm:$0xff]  }
  0x4b   :  { %v959_v34 = vld [vmem:[#allocation4 + $0xc4] ss:$8 sps:$4 sm:$0xff]   ;;  %v983_v35 = vld [vmem:[#allocation7 + $0x18] sm:$0xff]   ;;  %v95_v46 = vld [vmem:[#allocation2 + $0x10] sm:$0xff] }
  0x4c   :  { %842 = vmatpush3.bf16.msra.mxu1 %v977_v24  ;;  %v961_v36 = vld [vmem:[#allocation4 + $0xc0] ss:$8 sps:$4 sm:$0xff]   ;;  %v964_v38 = vld [vmem:[#allocation4 + $0xb0] ss:$8 sps:$4 sm:$0xff]   ;;  %v965_v39 = vld [vmem:[#allocation4 + $0xa4] ss:$8 sps:$4 sm:$0xff]   ;;  %v109_v49 = vpack.c.bf16 %v95_v46, %v93_v45 }
  0x4d   :  { %328 = vmatpush1.bf16.msra.mxu0 %v937_v7  ;;  %843 = vmatprep.subr.bf16.mxu1 %v978_v25  ;;  %v967_v40 = vld [vmem:[#allocation4 + $0xa0] ss:$8 sps:$4 sm:$0xff]   ;;  %v968_v41 = vld [vmem:[#allocation4 + $0x94] ss:$8 sps:$4 sm:$0xff]   ;;  %v970_v42 = vld [vmem:[#allocation4 + $0x90] ss:$8 sps:$4 sm:$0xff]  }
  0x4e   :  { %329 = vmatprep.subr.bf16.mxu0 %v938_v8  ;;  %v971_v43 = vld [vmem:[#allocation4 + $0x84] ss:$8 sps:$4 sm:$0xff]   ;;  %v973_v44 = vld [vmem:[#allocation4 + $0x80] ss:$8 sps:$4 sm:$0xff]   ;;  %v100_v48 = vld [vmem:[#allocation2 + $0x38] sm:$0xff] }
  0x4f   :  { %v98_v47 = vld [vmem:[#allocation2 + $0x28] sm:$0xff]  ;;  %v97_v51 = vld [vmem:[#allocation2 + $0x20] sm:$0xff]  ;;  %v99_v52 = vld [vmem:[#allocation2 + $0x30] sm:$0xff] }
  0x50   :  { %844 = vmatpush3.bf16.msra.mxu1 %v979_v28  ;;  %v112_v50 = vpack.c.bf16 %v100_v48, %v98_v47  ;;  %v102_v53 = vld [vmem:[#allocation2 + $0x48] sm:$0xff]  ;;  %v104_v54 = vld [vmem:[#allocation2 + $0x58] sm:$0xff]  ;;  %v111_v55 = vpack.c.bf16 %v99_v52, %v97_v51  ;;  %v101_v57 = vld [vmem:[#allocation2 + $0x40] sm:$0xff] }
  0x51   :  { %330 = vmatpush1.bf16.msra.mxu0 %v940_v9  ;;  %845 = vmatprep.subr.bf16.mxu1 %v980_v29  ;;  %v114_v56 = vpack.c.bf16 %v104_v54, %v102_v53  ;;  %v103_v58 = vld [vmem:[#allocation2 + $0x50] sm:$0xff]  ;;  %v106_v59 = vld [vmem:[#allocation2 + $0x68] sm:$0xff]  ;;  %v108_v60 = vld [vmem:[#allocation2 + $0x78] sm:$0xff]  ;;  %v151_v9 = vlaneseq }
  0x52   :  { %331 = vmatprep.subr.bf16.mxu0 %v941_v10  ;;  %v113_v61 = vpack.c.bf16 %v103_v58, %v101_v57  ;;  %v116_v62 = vpack.c.bf16 %v108_v60, %v106_v59  ;;  %v105_v63 = vld [vmem:[#allocation2 + $0x60] sm:$0xff]  ;;  %v107_v0 = vld [vmem:[#allocation2 + $0x70] sm:$0xff] }
  0x53   :  { %v115_v1 = vpack.c.bf16 %v107_v0, %v105_v63  ;;  %v984_v2 = vld [vmem:[#allocation7 + $0x50] sm:$0xff]   ;;  %v986_v4 = vld [vmem:[#allocation7 + $0x48] sm:$0xff]   ;;  %v988_v6 = vld [vmem:[#allocation7 + $0x40] sm:$0xff]   ;;  %v152_v10 = vshrl.u32 %v151_v9, 7 }
  0x54   :  { %846 = vmatpush3.bf16.msra.mxu1 %v981_v31  ;;  %v985_v3 = vld [vmem:[#allocation7 + $0x10] sm:$0xff]   ;;  %v987_v5 = vld [vmem:[#allocation7 + $0x8] sm:$0xff]   ;;  %v989_v7 = vld [vmem:[#allocation7] sm:$0xff]  }
  0x55   :  { %332 = vmatpush1.bf16.msra.mxu0 %v943_v11  ;;  %847 = vmatprep.subr.bf16.mxu1 %v982_v33  ;;  %v990_v8 = vld [vmem:[#allocation9 + $0x38] sm:$0xff]   ;;  %v157_v11 = vsub.s32 1, %v152_v10  ;;  %v991_v33 = vld [vmem:[#allocation9 + $0x30] sm:$0xff]  }
  0x56   :  { %333 = vmatprep.subr.bf16.mxu0 %v944_v12  ;;  %v153_v12 = vsub.s32 0, %v152_v10  ;;  %v149_v13 = vld [vmem:[#allocation6] sm:$0x3]  ;;  %v993_v10 = vld [vmem:[#allocation9 + $0x20] sm:$0xff]  }
  0x57   :  { %v1176_v15 = vrot.slane %v149_v13, %v157_v11  ;;  %v994_v11 = vld [vmem:[#allocation9 + $0x18] sm:$0xff]  }
  0x58   :  { %848 = vmatpush3.bf16.msra.mxu1 %v983_v35 }
  0x59   :  { %334 = vmatpush1.bf16.msra.mxu0 %v946_v16  ;;  %849 = vmatprep.subr.bf16.mxu1 %v984_v2  ;;  %v154_v16 = vrot.slane %v149_v13, %v153_v12  ;;  %v995_v12 = vld [vmem:[#allocation9 + $0x10] sm:$0xff]   ;;  %v996_v13 = vld [vmem:[#allocation9 + $0x8] sm:$0xff]  }
  0x5a   :  { %335 = vmatprep.subr.bf16.mxu0 %v947_v17 }
  0x5c   :  { %850 = vmatpush3.bf16.msra.mxu1 %v985_v3 }
  0x5d   :  { %336 = vmatpush1.bf16.msra.mxu0 %v949_v18  ;;  %851 = vmatprep.subr.bf16.mxu1 %v986_v4 }
  0x5e   :  { %337 = vmatprep.subr.bf16.mxu0 %v950_v19 }
  0x60   :  { %852 = vmatpush3.bf16.msra.mxu1 %v987_v5 }
  0x61   :  { %338 = vmatpush2.bf16.msra.mxu0 %v952_v22  ;;  %853 = vmatprep.subr.bf16.mxu1 %v988_v6 }
  0x62   :  { %339 = vmatprep.subr.bf16.mxu0 %v953_v26 }
  0x64   :  { %854 = vmatpush3.bf16.msra.mxu1 %v989_v7 }
  0x65   :  { %340 = vmatpush2.bf16.msra.mxu0 %v955_v27  ;;  %891 = vmatprep.subr.bf16.mxu1 %v990_v8 }
  0x66   :  { %341 = vmatprep.subr.bf16.mxu0 %v956_v30 }
  0x69   :  { %342 = vmatpush2.bf16.msra.mxu0 %v958_v32 }
  0x6a   :  { %343 = vmatprep.subr.bf16.mxu0 %v959_v34 }
  0x6d   :  { %344 = vmatpush2.bf16.msra.mxu0 %v961_v36 }
  0x6e   :  { %345 = vmatprep.subr.bf16.mxu0 %v962_v37 }
  0x71   :  { %346 = vmatpush2.bf16.msra.mxu0 %v964_v38 }
  0x72   :  { %347 = vmatprep.subr.bf16.mxu0 %v965_v39 }
  0x75   :  { %348 = vmatpush2.bf16.msra.mxu0 %v967_v40 }
  0x76   :  { %349 = vmatprep.subr.bf16.mxu0 %v968_v41  ;;  %v992_v41 = vld [vmem:[#allocation9 + $0x28] sm:$0xff]  }
  0x79   :  { %350 = vmatpush2.bf16.msra.mxu0 %v970_v42 }
  0x7a   :  { %351 = vmatprep.subr.bf16.mxu0 %v971_v43 }
  0x7d   :  { %352 = vmatpush2.bf16.msra.mxu0 %v973_v44 }
  0x80   :  { %354 = vmatmul.mubr.bf16.vlgmr.msra.gmra.mxu0 %v109_v49 }
  0x81   :  { %363 = vmatprep.mubr.bf16.mxu0 %v112_v50 }
  0x88   :  { %364 = vmatmul.mubr.bf16.gmra.mxu0 %v111_v55 }
  0x89   :  { %373 = vmatprep.mubr.bf16.mxu0 %v114_v56 }
  0x90   :  { %374 = vmatmul.mubr.bf16.gmra.mxu0 %v113_v61 }
  0x91   :  { %383 = vmatprep.mubr.bf16.mxu0 %v116_v62 }
  0x98   :  { %384 = vmatmul.mubr.bf16.gmra.mxu0 %v115_v1 }
 0x140   :  { %v355_v14 = vpop.f32.mrf.mxu0 }
 0x141   :  { %v356_v21 = vadd.f32 %v355_v14, %v154_v16  ;;  %v997_v14 = vld [vmem:[#allocation9] sm:$0xff]  }
 0x142   :  { %v357_v17 = vpop.f32.mrf.mxu0 }
 0x143   :  { %v358_v19 = vadd.f32 %v357_v17, %v1176_v15  ;;  %v394_v28 = vmax.f32 %v356_v21, 0.0 }
 0x144   :  { %v359_v18 = vpop.f32.mrf.mxu0 }
 0x145   :  { %v360_v20 = vadd.f32 %v359_v18, %v154_v16  ;;  %v395_v26 = vmax.f32 %v358_v19, 0.0  ;;  %v813_v18 = vld [vmem:[%s1220_s4] ss:$0 sm:$0xff] }
 0x146   :  { %v361_v22 = vpop.f32.mrf.mxu0 }
 0x147   :  { %v362_v23 = vadd.f32 %v361_v22, %v1176_v15  ;;  %v396_v24 = vmax.f32 %v360_v20, 0.0 }
 0x148   :  { %v365_v25 = vpop.f32.mrf.mxu0 }
 0x149   :  { %v397_v27 = vmax.f32 %v362_v23, 0.0  ;;  %v410_v31 = vpack.c.bf16 %v396_v24, %v394_v28  ;;  %v366_v36 = vadd.f32 %v365_v25, %v154_v16 }
 0x14a   :  { %v367_v29 = vpop.f32.mrf.mxu0 }
 0x14b   :  { %v411_v30 = vpack.c.bf16 %v397_v27, %v395_v26  ;;  %v368_v34 = vadd.f32 %v367_v29, %v1176_v15  ;;  %v398_v44 = vmax.f32 %v366_v36, 0.0 }
 0x14c   :  { %v369_v32 = vpop.f32.mrf.mxu0 }
 0x14d   :  { %v370_v35 = vadd.f32 %v369_v32, %v154_v16  ;;  %585 = vmatprep.mubr.bf16.mxu1 %v411_v30  ;;  %v399_v42 = vmax.f32 %v368_v34, 0.0 }
 0x14e   :  { %v371_v37 = vpop.f32.mrf.mxu0  ;;  %586 = vmatmul.mubr.bf16.vlgmr.msra.gmra.mxu1 %v410_v31 }
 0x14f   :  { %v372_v38 = vadd.f32 %v371_v37, %v1176_v15  ;;  %892 = vmatpush3.bf16.msra.mxu1 %v990_v8  ;;  %v400_v39 = vmax.f32 %v370_v35, 0.0 }
 0x150   :  { %v375_v40 = vpop.f32.mrf.mxu0  ;;  %893 = vmatprep.subr.bf16.mxu1 %v991_v33 }
 0x151   :  { %v401_v43 = vmax.f32 %v372_v38, 0.0  ;;  %v412_v47 = vpack.c.bf16 %v400_v39, %v398_v44  ;;  %v376_v51 = vadd.f32 %v375_v40, %v154_v16 }
 0x152   :  { %v377_v45 = vpop.f32.mrf.mxu0 }
 0x153   :  { %v413_v46 = vpack.c.bf16 %v401_v43, %v399_v42  ;;  %894 = vmatpush3.bf16.msra.mxu1 %v991_v33  ;;  %v378_v49 = vadd.f32 %v377_v45, %v1176_v15  ;;  %v402_v58 = vmax.f32 %v376_v51, 0.0 }
 0x154   :  { %v379_v48 = vpop.f32.mrf.mxu0  ;;  %895 = vmatprep.subr.bf16.mxu1 %v992_v41 }
 0x155   :  { %v380_v50 = vadd.f32 %v379_v48, %v154_v16  ;;  %593 = vmatprep.mubr.bf16.mxu1 %v413_v46  ;;  %v403_v56 = vmax.f32 %v378_v49, 0.0 }
 0x156   :  { %v381_v52 = vpop.f32.mrf.mxu0  ;;  %594 = vmatmul.mubr.bf16.gmra.mxu1 %v412_v47 }
 0x157   :  { %v382_v53 = vadd.f32 %v381_v52, %v1176_v15  ;;  %896 = vmatpush3.bf16.msra.mxu1 %v992_v41  ;;  %v404_v54 = vmax.f32 %v380_v50, 0.0 }
 0x158   :  { %v385_v55 = vpop.f32.mrf.mxu0  ;;  %897 = vmatprep.subr.bf16.mxu1 %v993_v10 }
 0x159   :  { %v405_v57 = vmax.f32 %v382_v53, 0.0  ;;  %v414_v61 = vpack.c.bf16 %v404_v54, %v402_v58  ;;  %v386_v1 = vadd.f32 %v385_v55, %v154_v16 }
 0x15a   :  { %v387_v59 = vpop.f32.mrf.mxu0 }
 0x15b   :  { %v415_v60 = vpack.c.bf16 %v405_v57, %v403_v56  ;;  %v388_v63 = vadd.f32 %v387_v59, %v1176_v15  ;;  %v406_v7 = vmax.f32 %v386_v1, 0.0  ;;  %898 = vmatpush3.bf16.msra.mxu1 %v993_v10 }
 0x15c   :  { %v389_v62 = vpop.f32.mrf.mxu0  ;;  %899 = vmatprep.subr.bf16.mxu1 %v994_v11 }
 0x15d   :  { %v390_v0 = vadd.f32 %v389_v62, %v154_v16  ;;  %601 = vmatprep.mubr.bf16.mxu1 %v415_v60  ;;  %v407_v5 = vmax.f32 %v388_v63, 0.0  ;;  %v830_v60 = vld [vmem:[%s1222_s6] ss:$0 sm:$0xff] }
 0x15e   :  { %v391_v2 = vpop.f32.mrf.mxu0  ;;  %602 = vmatmul.mubr.bf16.gmra.mxu1 %v414_v61 }
 0x15f   :  { %v392_v3 = vadd.f32 %v391_v2, %v1176_v15  ;;  %v408_v4 = vmax.f32 %v390_v0, 0.0  ;;  %900 = vmatpush3.bf16.msra.mxu1 %v994_v11 }
 0x160   :  { %901 = vmatprep.subr.bf16.mxu1 %v995_v12 }
 0x161   :  { %v409_v6 = vmax.f32 %v392_v3, 0.0  ;;  %v416_v9 = vpack.c.bf16 %v408_v4, %v406_v7 }
 0x163   :  { %v417_v8 = vpack.c.bf16 %v409_v6, %v407_v5  ;;  %902 = vmatpush3.bf16.msra.mxu1 %v995_v12 }
 0x164   :  { %903 = vmatprep.subr.bf16.mxu1 %v996_v13 }
 0x165   :  { %609 = vmatprep.mubr.bf16.mxu1 %v417_v8 }
 0x166   :  { %610 = vmatmul.mubr.bf16.gmra.mxu1 %v416_v9 }
 0x167   :  { %904 = vmatpush3.bf16.msra.mxu1 %v996_v13 }
 0x168   :  { %905 = vmatprep.subr.bf16.mxu1 %v997_v14 }
 0x16b   :  { %906 = vmatpush3.bf16.msra.mxu1 %v997_v14 }
 0x20e   :  { %v855_v15 = vpop.f32.mrf.mxu1 }
 0x210   :  { %v856_v16 = vpop.f32.mrf.mxu1 }
 0x211   :  { %v857_v17 = vadd.f32 %v856_v16, %v855_v15 }
 0x212   :  { %v858_v19 = vpop.f32.mrf.mxu1 }
 0x213   :  { %v588_v21 = vadd.f32 %v857_v17, %v813_v18 }
 0x214   :  { %v859_v20 = vpop.f32.mrf.mxu1 }
 0x215   :  { %v860_v22 = vadd.f32 %v859_v20, %v858_v19  ;;  %v618_v26 = vmax.f32 %v588_v21, 0.0 }
 0x216   :  { %v861_v23 = vpop.f32.mrf.mxu1 }
 0x217   :  { %v591_v24 = vadd.f32 %v860_v22, %v813_v18 }
 0x218   :  { %v862_v25 = vpop.f32.mrf.mxu1 }
 0x219   :  { %v619_v27 = vmax.f32 %v591_v24, 0.0  ;;  %v863_v28 = vadd.f32 %v862_v25, %v861_v23 }
 0x21a   :  { %v864_v29 = vpop.f32.mrf.mxu1 }
 0x21b   :  { %v626_v30 = vpack.c.bf16 %v619_v27, %v618_v26  ;;  %v596_v32 = vadd.f32 %v863_v28, %v813_v18 }
 0x21c   :  { %v865_v31 = vpop.f32.mrf.mxu1 }
 0x21d   :  { %v866_v33 = vadd.f32 %v865_v31, %v864_v29  ;;  %907 = vmatprep.mubr.bf16.mxu1 %v626_v30  ;;  %v620_v37 = vmax.f32 %v596_v32, 0.0 }
 0x21e   :  { %v867_v34 = vpop.f32.mrf.mxu1 }
 0x21f   :  { %v599_v35 = vadd.f32 %v866_v33, %v813_v18 }
 0x220   :  { %v868_v36 = vpop.f32.mrf.mxu1 }
 0x221   :  { %v621_v38 = vmax.f32 %v599_v35, 0.0  ;;  %v869_v39 = vadd.f32 %v868_v36, %v867_v34 }
 0x222   :  { %v870_v40 = vpop.f32.mrf.mxu1 }
 0x223   :  { %v627_v41 = vpack.c.bf16 %v621_v38, %v620_v37  ;;  %v604_v43 = vadd.f32 %v869_v39, %v813_v18 }
 0x224   :  { %v871_v42 = vpop.f32.mrf.mxu1 }
 0x225   :  { %v872_v44 = vadd.f32 %v871_v42, %v870_v40  ;;  %908 = vmatmul.mubr.bf16.vlgmr.msra.gmra.mxu1 %v627_v41  ;;  %v622_v48 = vmax.f32 %v604_v43, 0.0 }
 0x226   :  { %v873_v45 = vpop.f32.mrf.mxu1 }
 0x227   :  { %v607_v46 = vadd.f32 %v872_v44, %v813_v18 }
 0x228   :  { %v874_v47 = vpop.f32.mrf.mxu1 }
 0x229   :  { %v623_v49 = vmax.f32 %v607_v46, 0.0  ;;  %v875_v50 = vadd.f32 %v874_v47, %v873_v45 }
 0x22a   :  { %v876_v51 = vpop.f32.mrf.mxu1 }
 0x22b   :  { %v628_v52 = vpack.c.bf16 %v623_v49, %v622_v48  ;;  %v612_v54 = vadd.f32 %v875_v50, %v813_v18 }
 0x22c   :  { %v877_v53 = vpop.f32.mrf.mxu1 }
 0x22d   :  { %v878_v55 = vadd.f32 %v877_v53, %v876_v51  ;;  %911 = vmatprep.mubr.bf16.mxu1 %v628_v52  ;;  %v624_v57 = vmax.f32 %v612_v54, 0.0 }
 0x22f   :  { %v615_v56 = vadd.f32 %v878_v55, %v813_v18 }
 0x231   :  { %v625_v58 = vmax.f32 %v615_v56, 0.0 }
 0x233   :  { %v629_v59 = vpack.c.bf16 %v625_v58, %v624_v57 }
 0x235   :  { %912 = vmatmul.mubr.bf16.gmra.mxu1 %v629_v59 }
 0x2e5   :  { %v909_v61 = vpop.f32.mrf.mxu1 }
 0x2e6   :  { %v744_v62 = vadd.f32 %v909_v61, %v830_v60 }
 0x2e7   :  { %v735_v63 = vpop.f32.mrf.mxu1 }
 0x2e8   :  { %768 = vst [vmem:[%s1223_s7 + $0x10] sm:$0xff] %v744_v62  ;;  %v736_v0 = vadd.f32 %v830_v60, %v735_v63 }
 0x2e9   :  { %v910_v1 = vpop.f32.mrf.mxu1 }
 0x2ea   :  { %766 = vst [vmem:[%s1223_s7] sm:$0xff] %v736_v0  ;;  %v747_v2 = vadd.f32 %v910_v1, %v830_v60 }
 0x2eb   :  { %v738_v3 = vpop.f32.mrf.mxu1 }
 0x2ec   :  { %769 = vst [vmem:[%s1223_s7 + $0x18] sm:$0xff] %v747_v2  ;;  %v739_v4 = vadd.f32 %v830_v60, %v738_v3 }
 0x2ee   :  { %767 = vst [vmem:[%s1223_s7 + $0x8] sm:$0xff] %v739_v4 }
 0x2f5   :  { %v913_v5 = vpop.f32.mrf.mxu1 }
 0x2f6   :  { %v760_v6 = vadd.f32 %v913_v5, %v830_v60 }
 0x2f7   :  { %v751_v7 = vpop.f32.mrf.mxu1 }
 0x2f8   :  { %772 = vst [vmem:[%s1223_s7 + $0x30] sm:$0xff] %v760_v6  ;;  %v752_v8 = vadd.f32 %v830_v60, %v751_v7 }
 0x2f9   :  { %v914_v9 = vpop.f32.mrf.mxu1 }
 0x2fa   :  { %770 = vst [vmem:[%s1223_s7 + $0x20] sm:$0xff] %v752_v8  ;;  %v763_v10 = vadd.f32 %v914_v9, %v830_v60 }
 0x2fb   :  { %v754_v11 = vpop.f32.mrf.mxu1 }
 0x2fc   :  { %773 = vst [vmem:[%s1223_s7 + $0x38] sm:$0xff] %v763_v10  ;;  %v755_v12 = vadd.f32 %v830_v60, %v754_v11 }
 0x2fe   :  { %771 = vst [vmem:[%s1223_s7 + $0x28] sm:$0xff] %v755_v12 }
 0x2ff   :  { %778 = vsyncpa [#allocation3], 1 }
 0x300   :  { %779 = vsyncpa [#allocation5], 1 }
 0x301   :  { %780 = vsyncpa [#allocation8], 1 }

</bundles_post_ra>
